<compile_context>
chip_gen: v6e
topology: v6e:2x2x1
jax: 0.10.0
libtpu: 0.0.40
codegen_flags: <defaults>
</compile_context>

<pallas_src>
import functools

import jax
import jax.numpy as jnp
import numpy as np
from jax.experimental import pallas as pl
from jax.experimental.pallas import tpu as pltpu

EPS = 1e-5
LANE = 128


def _round_up(x, m):
    return ((x + m - 1) // m) * m


def _make_fused_kernel(NT, m_true, resident):
    """grid = (phase, batch, m_tile); phase 0 = conv + stats, phase 1 = BN + ReLU."""
    inv_m = 1.0 / float(m_true)

    def kernel(p_ref, w_ref, gb_ref, out_ref, *scratch):
        # p_ref  : (1, CK, TM)    bf16  im2col tile (batch n, lane cols j*TM..)
        # w_ref  : (CW, CK)       bf16  resident weight matrix (CW = Cout padded to 16)
        # gb_ref : (Cout, 128)    f32   col 0 = gamma, col 1 = beta (resident)
        # out_ref: (1, Cout, TM)  f32   output tile (already NCHW-flattened layout)
        if resident:
            conv_ref, sum_ref, sq_ref = scratch
        else:
            sum_ref, sq_ref = scratch

        cout = out_ref.shape[1]
        phase = pl.program_id(0)
        n = pl.program_id(1)
        j = pl.program_id(2)

        @pl.when((phase == 0) & (n == 0) & (j == 0))
        def _():
            sum_ref[...] = jnp.zeros_like(sum_ref)
            sq_ref[...] = jnp.zeros_like(sq_ref)

        @pl.when(phase == 0)
        def _():
            # (Cout, TM) f32 conv tile on the MXU; zero-padded M columns stay 0.
            acc = jnp.dot(w_ref[...], p_ref[0],
                          preferred_element_type=jnp.float32)[:cout]
            if resident:
                conv_ref[n * NT + j] = acc
            # Per-channel batch statistics (cross-lane reduce -> idle XLU slot).
            sum_ref[...] += jnp.sum(acc, axis=1, keepdims=True)
            sq_ref[...] += jnp.sum(acc * acc, axis=1, keepdims=True)

        @pl.when(phase == 1)
        def _():
            # Fold batch mean/var + gamma/beta into per-channel scale/shift.
            # (E[x^2]-mean^2 in f32 is fine at these sizes; a shifted/two-pass sum
            #  would be needed if |mean| >> std at very large M.)
            mean = sum_ref[...] * inv_m                            # (Cout, 1)
            var = jnp.maximum(sq_ref[...] * inv_m - mean * mean, 0.0)
            scale = gb_ref[:, 0:1] * jax.lax.rsqrt(var + EPS)      # gamma * inv_std
            shift = gb_ref[:, 1:2] - mean * scale                  # beta - mean*scale
            if resident:
                conv = conv_ref[n * NT + j]                        # exact f32 stats values
            else:
                conv = jnp.dot(w_ref[...], p_ref[0],               # large-M fallback:
                               preferred_element_type=jnp.float32)[:cout]
            out_ref[0] = jnp.maximum(conv * scale + shift, 0.0).astype(out_ref.dtype)

    return kernel


@functools.partial(jax.jit, static_argnums=(5, 6, 7))
def conv2d_transpose_bn_relu(x, weight, bias, gamma, beta,
                             stride, padding, output_padding=0):
    """ConvTranspose2d(+bias) -> BatchNorm2d (training batch stats) -> ReLU.

    x: (N, Cin, H, W) NCHW.  weight: (Cin, Cout, K, K) (PyTorch ConvTranspose2d).
    `bias` is accepted for API parity but unused: training-mode BN subtracts the
    per-channel batch mean, so a per-channel constant cancels exactly.
    """
    del bias  # exactly cancelled by BN batch-mean subtraction (variance unchanged)

    N, Cin, H, W = x.shape
    _, Cout, K, _ = weight.shape
    s = stride

    OH = (H - 1) * s - 2 * padding + K + output_padding
    OW = (W - 1) * s - 2 * padding + K + output_padding
    OHW = OH * OW
    CK = Cin * K * K

    # ---- wrapper glue: dilate + pad input, build transposed im2col P^T (bf16) ----
    pad_lo = K - 1 - padding
    pad_hi = K - 1 - padding + output_padding
    x_b = x.astype(jnp.bfloat16)
    x_pad = jax.lax.pad(x_b, jnp.zeros((), jnp.bfloat16),
                        ((0, 0, 0), (0, 0, 0),
                         (pad_lo, pad_hi, s - 1), (pad_lo, pad_hi, s - 1)))

    cols = [x_pad[:, :, kh:kh + OH, kw:kw + OW]          # (N, Cin, OH, OW)
            for kh in range(K) for kw in range(K)]
    patches = jnp.stack(cols, axis=2)                    # (N, Cin, K*K, OH, OW)
    P = patches.reshape(N, CK, OHW)                      # taps on sublanes, M on lanes

    # ConvTranspose weight -> (Cout, CK) matmul operand (flipped taps).
    w_flip = weight[:, :, ::-1, ::-1]                    # (Cin, Cout, K, K)
    W2 = jnp.transpose(w_flip, (1, 0, 2, 3)).reshape(Cout, CK).astype(jnp.bfloat16)
    CW = _round_up(Cout, 16)                             # bf16 sublane packing
    W2 = jnp.pad(W2, ((0, CW - Cout), (0, 0)))           # (CW, CK)

    gb = jnp.stack([gamma.astype(jnp.float32),
                    beta.astype(jnp.float32)], axis=1)   # (Cout, 2)
    gb = jnp.pad(gb, ((0, 0), (0, LANE - 2)))            # (Cout, 128) lane-aligned

    # ---- tiling: only the lane (M) axis is tiled; Cout / CK ride unpadded --------
    ohw_lane = _round_up(OHW, LANE)
    tm_cap = max(LANE, (4 * 1024 * 1024 // (CK * 2)) // LANE * LANE)
    TM = min(2048, ohw_lane, tm_cap)
    OHW_p = _round_up(OHW, TM)
    NT = OHW_p // TM

    P_p = jnp.pad(P, ((0, 0), (0, 0), (0, OHW_p - OHW)))  # zero cols keep stats exact

    # Keep the f32 conv intermediate resident in VMEM when it comfortably fits on
    # every TPU generation (v7x: 64 MiB physical); otherwise recompute in phase 1.
    resident = (N * NT * Cout * TM * 4) <= 12 * 1024 * 1024

    scratch = [pltpu.VMEM((Cout, 1), jnp.float32),        # per-channel sum
               pltpu.VMEM((Cout, 1), jnp.float32)]        # per-channel sum of squares
    if resident:
        scratch = [pltpu.VMEM((N * NT, Cout, TM), jnp.float32)] + scratch

    if resident:
        # Phase 1 never reads P: pin its index to the last phase-0 block so no
        # redundant DMA is issued.
        p_map = lambda ph, n, j: ((1 - ph) * n + ph * (N - 1), 0,
                                  (1 - ph) * j + ph * (NT - 1))
    else:
        p_map = lambda ph, n, j: (n, 0, j)
    # Phase 0 never writes the output: pin it to block (0,0,0), which phase 1
    # revisits first and fully overwrites -> no garbage write-backs.
    out_map = lambda ph, n, j: (ph * n, 0, ph * j)

    kernel = _make_fused_kernel(NT, N * OHW, resident)

    out_flat = pl.pallas_call(
        kernel,
        out_shape=jax.ShapeDtypeStruct((N, Cout, OHW_p), jnp.float32),
        grid_spec=pltpu.PrefetchScalarGridSpec(
            num_scalar_prefetch=0,
            grid=(2, N, NT),                                        # (phase, batch, M tile)
            in_specs=[
                pl.BlockSpec((1, CK, TM), p_map),
                pl.BlockSpec((CW, CK), lambda ph, n, j: (0, 0)),    # resident weights
                pl.BlockSpec((Cout, LANE), lambda ph, n, j: (0, 0)),  # resident gamma/beta
            ],
            out_specs=pl.BlockSpec((1, Cout, TM), out_map),
            scratch_shapes=scratch),
        # Phase 1 depends on the phase-0 statistics and the stats accumulation is a
        # reduction over (batch, tile) -> all grid axes must stay sequential.
        compiler_params=pltpu.CompilerParams(
            dimension_semantics=("arbitrary", "arbitrary", "arbitrary"),
            vmem_limit_bytes=32 * 1024 * 1024),
    )(P_p, W2, gb)

    # (N, Cout, OH*OW) f32 is NCHW already flattened: drop lane padding (a no-op
    # when OHW is a multiple of TM) and reshape -- no transpose needed.
    return out_flat[:, :, :OHW].reshape(N, Cout, OH, OW)


def _reference(x, weight, bias, gamma, beta, stride, padding, output_padding=0):
    """Pure-JAX f32 reference mirroring PyTorch semantics (bias included)."""
    Cin, Cout, K, _ = weight.shape
    pad_lo = K - 1 - padding
    pad_hi = K - 1 - padding + output_padding
    w_conv = jnp.transpose(weight[:, :, ::-1, ::-1], (1, 0, 2, 3))  # (Cout, Cin, K, K)
    conv = jax.lax.conv_general_dilated(
        x, w_conv, window_strides=(1, 1),
        padding=[(pad_lo, pad_hi), (pad_lo, pad_hi)],
        lhs_dilation=(stride, stride),
        dimension_numbers=("NCHW", "OIHW", "NCHW"))
    conv = conv + bias[None, :, None, None]
    mean = conv.mean(axis=(0, 2, 3), keepdims=True)
    var = conv.var(axis=(0, 2, 3), keepdims=True)  # biased var = BN training forward
    y = gamma[None, :, None, None] * (conv - mean) / jnp.sqrt(var + EPS) \
        + beta[None, :, None, None]
    return jnp.maximum(y, 0.0)


if __name__ == "__main__":
    # Module config: Conv2dTranspose(cin=4, cout=8, kernel_size=4, stride=2, padding=1)
    cin, cout, K, stride, padding, output_padding = 4, 8, 4, 2, 1, 0
    N, H, W = 2, 16, 16

    key = jax.random.PRNGKey(0)
    kx, kw, kb, kg, kbe = jax.random.split(key, 5)
    x = jax.random.normal(kx, (N, cin, H, W), jnp.float32)
    weight = jax.random.normal(kw, (cin, cout, K, K), jnp.float32) * 0.1
    bias = jax.random.normal(kb, (cout,), jnp.float32) * 0.1
    gamma = 1.0 + 0.1 * jax.random.normal(kg, (cout,), jnp.float32)
    beta = 0.1 * jax.random.normal(kbe, (cout,), jnp.float32)

    out = conv2d_transpose_bn_relu(x, weight, bias, gamma, beta,
                                   stride, padding, output_padding)
    out = jax.block_until_ready(out)

    OH = (H - 1) * stride - 2 * padding + K + output_padding
    OW = (W - 1) * stride - 2 * padding + K + output_padding
    assert out.shape == (N, cout, OH, OW)

    # bf16 MXU operands (f32 accumulation) vs an all-f32 reference -> ~1e-2-level
    # agreement; tolerance chosen accordingly.
    ref = _reference(x, weight, bias, gamma, beta, stride, padding, output_padding)
    np.testing.assert_allclose(np.asarray(out), np.asarray(ref), atol=5e-2, rtol=5e-2)

    print("KERNEL_OK")
</pallas_src>

<mosaic_0001>
module attributes {stable_mosaic.version = 11 : i64} {
  func.func @kernel(%arg0: i32, %arg1: i32, %arg2: i32, %arg3: memref<1x64x1024xbf16, #tpu.memory_space<vmem>>, %arg4: memref<16x64xbf16, #tpu.memory_space<vmem>>, %arg5: memref<8x128xf32, #tpu.memory_space<vmem>>, %arg6: memref<1x8x1024xf32, #tpu.memory_space<vmem>>, %arg7: memref<2x8x1024xf32, #tpu.memory_space<vmem>>, %arg8: memref<8x1xf32, #tpu.memory_space<vmem>>, %arg9: memref<8x1xf32, #tpu.memory_space<vmem>>) attributes {dimension_semantics = [#tpu.dimension_semantics<arbitrary>, #tpu.dimension_semantics<arbitrary>, #tpu.dimension_semantics<arbitrary>], iteration_bounds = array<i64: 2, 2, 1>, scalar_prefetch = 0 : i64, scratch_operands = 3 : i64, tpu.core_type = #tpu.core_type<tc>, window_params = [{transform_indices = @transform_0, window_bounds = array<i64: 1, 64, 1024>}, {pipeline_mode = #tpu.pipeline_mode<synchronous>, transform_indices = @transform_1, window_bounds = array<i64: 16, 64>}, {pipeline_mode = #tpu.pipeline_mode<synchronous>, transform_indices = @transform_2, window_bounds = array<i64: 8, 128>}, {transform_indices = @transform_3, window_bounds = array<i64: 1, 8, 1024>}]} {
    %c0_i32 = arith.constant 0 : i32
    %0 = arith.cmpi eq, %arg0, %c0_i32 : i32
    %c0_i32_0 = arith.constant 0 : i32
    %1 = arith.cmpi eq, %arg1, %c0_i32_0 : i32
    %2 = arith.andi %0, %1 : i1
    %c0_i32_1 = arith.constant 0 : i32
    %3 = arith.cmpi eq, %arg2, %c0_i32_1 : i32
    %4 = arith.andi %2, %3 : i1
    %5 = arith.extui %4 : i1 to i32
    %c0_i32_2 = arith.constant 0 : i32
    %6 = arith.cmpi ne, %5, %c0_i32_2 : i32
    scf.if %6 {
      %cst = arith.constant 0.000000e+00 : f32
      %13 = vector.broadcast %cst : f32 to vector<8x1xf32>
      %c0 = arith.constant 0 : index
      %c0_6 = arith.constant 0 : index
      %14 = vector.load %arg8[%c0, %c0_6] : memref<8x1xf32, #tpu.memory_space<vmem>>, vector<8x1xf32>
      tpu.vector_store %arg8[%c0, %c0_6], %13 {strides = array<i32>} : memref<8x1xf32, #tpu.memory_space<vmem>>, vector<8x1xf32>,
      %cst_7 = arith.constant 0.000000e+00 : f32
      %15 = vector.broadcast %cst_7 : f32 to vector<8x1xf32>
      %c0_8 = arith.constant 0 : index
      %c0_9 = arith.constant 0 : index
      %16 = vector.load %arg9[%c0_8, %c0_9] : memref<8x1xf32, #tpu.memory_space<vmem>>, vector<8x1xf32>
      tpu.vector_store %arg9[%c0_8, %c0_9], %15 {strides = array<i32>} : memref<8x1xf32, #tpu.memory_space<vmem>>, vector<8x1xf32>,
    } else {
    }
    %c0_i32_3 = arith.constant 0 : i32
    %7 = arith.cmpi eq, %arg0, %c0_i32_3 : i32
    %8 = arith.extui %7 : i1 to i32
    %c0_i32_4 = arith.constant 0 : i32
    %9 = arith.cmpi ne, %8, %c0_i32_4 : i32
    scf.if %9 {
      %c0 = arith.constant 0 : index
      %c0_6 = arith.constant 0 : index
      %13 = vector.load %arg4[%c0, %c0_6] : memref<16x64xbf16, #tpu.memory_space<vmem>>, vector<16x64xbf16>
      %c0_7 = arith.constant 0 : index
      %c0_8 = arith.constant 0 : index
      %c0_9 = arith.constant 0 : index
      %14 = vector.load %arg3[%c0_7, %c0_8, %c0_9] : memref<1x64x1024xbf16, #tpu.memory_space<vmem>>, vector<1x64x1024xbf16>
      %15 = vector.shape_cast %14 : vector<1x64x1024xbf16> to vector<64x1024xbf16>
      %cst = arith.constant dense<0.000000e+00> : vector<16x1024xf32>
      %16 = tpu.matmul %13, %15, %cst {dimension_numbers = #tpu.dot_dimension_numbers<[1], [0], [0], [1], [0, 0, 1, 1], [], []>} : vector<16x64xbf16>, vector<64x1024xbf16>, vector<16x1024xf32> -> vector<16x1024xf32>
      %17 = vector.extract_strided_slice %16 {offsets = [0, 0], sizes = [8, 1024], strides = [1, 1]} : vector<16x1024xf32> to vector<8x1024xf32>
      %c1_i32_10 = arith.constant 1 : i32
      %18 = arith.muli %arg1, %c1_i32_10 : i32
      %19 = arith.addi %18, %arg2 : i32
      %20 = arith.index_cast %19 : i32 to index
      %c0_11 = arith.constant 0 : index
      %c0_12 = arith.constant 0 : index
      %21 = vector.load %arg7[%20, %c0_11, %c0_12] : memref<2x8x1024xf32, #tpu.memory_space<vmem>>, vector<1x8x1024xf32>
      %22 = vector.shape_cast %21 : vector<1x8x1024xf32> to vector<8x1024xf32>
      %23 = vector.shape_cast %17 : vector<8x1024xf32> to vector<1x8x1024xf32>
      tpu.vector_store %arg7[%20, %c0_11, %c0_12], %23 {strides = array<i32>} : memref<2x8x1024xf32, #tpu.memory_space<vmem>>, vector<1x8x1024xf32>,
      %c0_13 = arith.constant 0 : index
      %c0_14 = arith.constant 0 : index
      %24 = vector.load %arg8[%c0_13, %c0_14] : memref<8x1xf32, #tpu.memory_space<vmem>>, vector<8x1xf32>
      %cst_15 = arith.constant dense<0.000000e+00> : vector<8xf32>
      %25 = vector.multi_reduction <add>, %17, %cst_15 [1] : vector<8x1024xf32> to vector<8xf32>
      %26 = vector.shape_cast %25 : vector<8xf32> to vector<8x1xf32>
      %27 = arith.addf %24, %26 : vector<8x1xf32>
      %c0_16 = arith.constant 0 : index
      %c0_17 = arith.constant 0 : index
      %28 = vector.load %arg8[%c0_16, %c0_17] : memref<8x1xf32, #tpu.memory_space<vmem>>, vector<8x1xf32>
      tpu.vector_store %arg8[%c0_16, %c0_17], %27 {strides = array<i32>} : memref<8x1xf32, #tpu.memory_space<vmem>>, vector<8x1xf32>,
      %c0_18 = arith.constant 0 : index
      %c0_19 = arith.constant 0 : index
      %29 = vector.load %arg9[%c0_18, %c0_19] : memref<8x1xf32, #tpu.memory_space<vmem>>, vector<8x1xf32>
      %30 = arith.mulf %17, %17 : vector<8x1024xf32>
      %cst_20 = arith.constant dense<0.000000e+00> : vector<8xf32>
      %31 = vector.multi_reduction <add>, %30, %cst_20 [1] : vector<8x1024xf32> to vector<8xf32>
      %32 = vector.shape_cast %31 : vector<8xf32> to vector<8x1xf32>
      %33 = arith.addf %29, %32 : vector<8x1xf32>
      %c0_21 = arith.constant 0 : index
      %c0_22 = arith.constant 0 : index
      %34 = vector.load %arg9[%c0_21, %c0_22] : memref<8x1xf32, #tpu.memory_space<vmem>>, vector<8x1xf32>
      tpu.vector_store %arg9[%c0_21, %c0_22], %33 {strides = array<i32>} : memref<8x1xf32, #tpu.memory_space<vmem>>, vector<8x1xf32>,
    } else {
    }
    %c1_i32 = arith.constant 1 : i32
    %10 = arith.cmpi eq, %arg0, %c1_i32 : i32
    %11 = arith.extui %10 : i1 to i32
    %c0_i32_5 = arith.constant 0 : i32
    %12 = arith.cmpi ne, %11, %c0_i32_5 : i32
    scf.if %12 {
      %c0 = arith.constant 0 : index
      %c0_6 = arith.constant 0 : index
      %13 = vector.load %arg8[%c0, %c0_6] : memref<8x1xf32, #tpu.memory_space<vmem>>, vector<8x1xf32>
      %cst = arith.constant 4.8828125E-4 : f32
      %14 = vector.broadcast %cst : f32 to vector<8x1xf32>
      %15 = arith.mulf %13, %14 : vector<8x1xf32>
      %c0_7 = arith.constant 0 : index
      %c0_8 = arith.constant 0 : index
      %16 = vector.load %arg9[%c0_7, %c0_8] : memref<8x1xf32, #tpu.memory_space<vmem>>, vector<8x1xf32>
      %cst_9 = arith.constant 4.8828125E-4 : f32
      %17 = vector.broadcast %cst_9 : f32 to vector<8x1xf32>
      %18 = arith.mulf %16, %17 : vector<8x1xf32>
      %19 = arith.mulf %15, %15 : vector<8x1xf32>
      %20 = arith.subf %18, %19 : vector<8x1xf32>
      %cst_10 = arith.constant 0.000000e+00 : f32
      %21 = vector.broadcast %cst_10 : f32 to vector<8x1xf32>
      %22 = arith.maximumf %20, %21 : vector<8x1xf32>
      %c0_11 = arith.constant 0 : index
      %c0_12 = arith.constant 0 : index
      %23 = vector.load %arg5[%c0_11, %c0_12] : memref<8x128xf32, #tpu.memory_space<vmem>>, vector<8x1xf32>
      %cst_13 = arith.constant 9.99999974E-6 : f32
      %24 = vector.broadcast %cst_13 : f32 to vector<8x1xf32>
      %25 = arith.addf %22, %24 : vector<8x1xf32>
      %26 = math.rsqrt %25 : vector<8x1xf32>
      %27 = arith.mulf %23, %26 : vector<8x1xf32>
      %c0_14 = arith.constant 0 : index
      %c1 = arith.constant 1 : index
      %28 = vector.load %arg5[%c0_14, %c1] : memref<8x128xf32, #tpu.memory_space<vmem>>, vector<8x1xf32>
      %29 = arith.mulf %15, %27 : vector<8x1xf32>
      %30 = arith.subf %28, %29 : vector<8x1xf32>
      %c1_i32_15 = arith.constant 1 : i32
      %31 = arith.muli %arg1, %c1_i32_15 : i32
      %32 = arith.addi %31, %arg2 : i32
      %33 = arith.index_cast %32 : i32 to index
      %c0_16 = arith.constant 0 : index
      %c0_17 = arith.constant 0 : index
      %34 = vector.load %arg7[%33, %c0_16, %c0_17] : memref<2x8x1024xf32, #tpu.memory_space<vmem>>, vector<1x8x1024xf32>
      %35 = vector.shape_cast %34 : vector<1x8x1024xf32> to vector<8x1024xf32>
      %36 = vector.broadcast %27 : vector<8x1xf32> to vector<8x1024xf32>
      %37 = arith.mulf %35, %36 : vector<8x1024xf32>
      %38 = vector.broadcast %30 : vector<8x1xf32> to vector<8x1024xf32>
      %39 = arith.addf %37, %38 : vector<8x1024xf32>
      %cst_18 = arith.constant 0.000000e+00 : f32
      %40 = vector.broadcast %cst_18 : f32 to vector<8x1024xf32>
      %41 = arith.maximumf %39, %40 : vector<8x1024xf32>
      %c0_19 = arith.constant 0 : index
      %c0_20 = arith.constant 0 : index
      %c0_21 = arith.constant 0 : index
      %42 = vector.load %arg6[%c0_19, %c0_20, %c0_21] : memref<1x8x1024xf32, #tpu.memory_space<vmem>>, vector<1x8x1024xf32>
      %43 = vector.shape_cast %42 : vector<1x8x1024xf32> to vector<8x1024xf32>
      %44 = vector.shape_cast %41 : vector<8x1024xf32> to vector<1x8x1024xf32>
      tpu.vector_store %arg6[%c0_19, %c0_20, %c0_21], %44 {strides = array<i32>} : memref<1x8x1024xf32, #tpu.memory_space<vmem>>, vector<1x8x1024xf32>,
    } else {
    }
    return
  }
  func.func @transform_0(%arg0: i32, %arg1: i32, %arg2: i32) -> (i32, i32, i32) {
    %c1_i32 = arith.constant 1 : i32
    %0 = arith.subi %c1_i32, %arg0 : i32
    %1 = arith.muli %0, %arg1 : i32
    %c1_i32_0 = arith.constant 1 : i32
    %2 = arith.muli %arg0, %c1_i32_0 : i32
    %3 = arith.addi %1, %2 : i32
    %c1_i32_1 = arith.constant 1 : i32
    %4 = arith.subi %c1_i32_1, %arg0 : i32
    %5 = arith.muli %4, %arg2 : i32
    %c0_i32 = arith.constant 0 : i32
    %6 = arith.muli %arg0, %c0_i32 : i32
    %7 = arith.addi %5, %6 : i32
    %c0_i32_2 = arith.constant 0 : i32
    %c0_i32_3 = arith.constant 0 : i32
    return %3, %c0_i32_2, %7 : i32, i32, i32
  }
  func.func @transform_1(%arg0: i32, %arg1: i32, %arg2: i32) -> (i32, i32) {
    %c0_i32 = arith.constant 0 : i32
    %c0_i32_0 = arith.constant 0 : i32
    %c0_i32_1 = arith.constant 0 : i32
    return %c0_i32, %c0_i32_0 : i32, i32
  }
  func.func @transform_2(%arg0: i32, %arg1: i32, %arg2: i32) -> (i32, i32) {
    %c0_i32 = arith.constant 0 : i32
    %c0_i32_0 = arith.constant 0 : i32
    %c0_i32_1 = arith.constant 0 : i32
    return %c0_i32, %c0_i32_0 : i32, i32
  }
  func.func @transform_3(%arg0: i32, %arg1: i32, %arg2: i32) -> (i32, i32, i32) {
    %0 = arith.muli %arg0, %arg1 : i32
    %1 = arith.muli %arg0, %arg2 : i32
    %c0_i32 = arith.constant 0 : i32
    %c0_i32_0 = arith.constant 0 : i32
    return %0, %c0_i32, %1 : i32, i32, i32
  }
}

</mosaic_0001>

<bundles_post_ra>
// kernel: conv2d_transpose_bn_relu.1
= control target key start
LH: loop header
LB: loop body
LE: loop exit
PB: predicated region body
PF: predicated region fallthrough
CT: control target
= control target key end

     0   :  { %s1038_s12 = smov 0   ;;  %s1040_s13 = smov 0   ;;  %s1172_s0 = inlined_call_operand.vmem [shape: bf16[2,64,1024], index: 0, kind: input, shape index: {}]   ;;  %s1173_s1 = inlined_call_operand.vmem [shape: bf16[16,64], index: 1, kind: input, shape index: {}]   ;;  %s1174_s2 = inlined_call_operand.vmem [shape: f32[8,128], index: 2, kind: input, shape index: {}]   ;;  %s1175_s3 = inlined_call_operand.vmem [shape: f32[2,8,1024], index: 3, kind: output, shape index: {}]  }
   0x1   :  { %s1042_s14 = smov 0   ;;  %s1044_s15 = smov 0  }
   0x2   :  { %s1046_s16 = smov 0  }
   0x3 LB: > { %s28_s17 = sadd.s32 1, %s1003_s14  ;;  %s32_s18 = sadd.s32 1, %s1007_s15  ;;  %s1011_s16 = sphi %s1046_s16, %s13_s16   ;;  %s1007_s15 = sphi %s1044_s15, %s1179_s15   ;;  %s1003_s14 = sphi %s1042_s14, %s1178_s14   ;;  %s999_s13 = sphi %s1040_s13, %s1177_s13   ;;  %s995_s12 = sphi %s1038_s12, %s1176_s12  }
   0x4   : > { %p30_p0 = scmp.ge.s32.totalorder %s28_s17, 2  ;;  %p867_p1 = scmp.ge.s32.totalorder %s1011_s16, 1 }
   0x5   : > { %p185_p2 = scmp.lt.s32.totalorder %s1011_s16, 5 }
   0x6   : > { %s1181_s17 = smov (%p30_p0, %s28_s17), 0  ;;  %s1183_s18 = smov (!%p30_p0, %s32_s18), %s1007_s15 }
   0x7   : > { %p186_p3 = pnand %p867_p1, %p185_p2  ;;  %p34_p4 = scmp.ge.s32.totalorder %s1183_s18, 2 }
   0x8   : > { %s223_s19 = ssub.s32 (!%p186_p3), 1, %s999_s13  ;;  %s241_s20 = smul.u32 (!%p186_p3), %s995_s12, %s999_s13 }
   0x9   : > { %s1185_s18 = smov (%p34_p4, %s1183_s18), 0  ;;  %189 = sbr.rel (%p186_p3) target bundleno = 698 (0x2ba), region = 32 }
   0xa   : > { %s224_s21 = smul.u32 (!%p186_p3), %s995_s12, %s223_s19  ;;  %p256_p5 = scmp.eq.s32.totalorder (!%p186_p3), %s999_s13, 0 }
   0xb   : > { %p244_p6 = scmp.lt.s32.totalorder (!%p186_p3), %s241_s20, 1  ;;  %p257_p7 = scmp.eq.s32.totalorder (!%p186_p3), %s995_s12, 0 }
   0xc   : > { %s225_s22 = sadd.s32 (!%p186_p3), %s999_s13, %s224_s21 }
   0xd   : > { %p228_p8 = scmp.lt.s32.totalorder (!%p186_p3), %s225_s22, 1  ;;  %p258_p9 = pnand (!%p186_p3), %p257_p7, %p256_p5 }
   0xe   : > { %s1187_s20 = smov (!%p244_p6, %s241_s20), 1 }
   0xf   : > { %s1189_s22 = smov (!%p228_p8, %s225_s22), 1  ;;  %s919_s23 = sshll.u32 %s1187_s20, 6 }
  0x10   : > { %s918_s24 = sshll.u32 %s1189_s22, 8  ;;  %s1082_s27 = scalar_lea.vmem %s1175_s3, %s919_s23 }
  0x11   : > { %s1087_s30 = scalar_lea.vmem %s1172_s0, %s918_s24  ;;  %264 = sbr.rel (%p258_p9) target bundleno = 24 (0x18), region = 36 }
  0x16   : > { %vm265_vm0 = vcmask 7168   ;;  %v1013_v0 = vmov 0.0  }
  0x17   : > { %266 = vst.msk [vmem:[#allocation3] sm:$0xff] %vm265_vm0, %v1013_v0  ;;  %267 = vst.msk [vmem:[#allocation4] sm:$0xff] %vm265_vm0, %v1013_v0 }
  0x18 PF: > { %p873_p10 = scmp.ne.s32.totalorder %s999_s13, 0 }
  0x19   : > { %s920_s6 = sshll.u32 (!%p873_p10), %s995_s12, 6 }
  0x1a   : > { %270 = sbr.rel (%p873_p10) target bundleno = 413 (0x19d), region = 40  ;;  %s1134_s7 = scalar_lea.vmem (!%p873_p10), [#allocation2], %s920_s6 }
  0x1f   : > { %v297_v1 = vld [vmem:[%s1087_s30 + $0xc0] sm:$0xff]  ;;  %v298_v3 = vld [vmem:[%s1087_s30 + $0xc8] sm:$0xff]  ;;  %v1014_v9 = vmov 0   ;;  %v299_v32 = vld [vmem:[%s1087_s30 + $0xd0] sm:$0xff]  ;;  %vm470_vm1 = vcmask 523264   ;;  %vm661_vm2 = vcmask 7168  }
  0x20   : > { %v301_v2 = vld [vmem:[%s1087_s30 + $0xe0] sm:$0xff]  ;;  %v302_v5 = vld [vmem:[%s1087_s30 + $0xe8] sm:$0xff]  ;;  %506 = vmatprep.mubr.bf16.mxu0 %v1014_v9  ;;  %547 = vmatprep.mubr.bf16.mxu1 %v1014_v9  ;;  %v303_v33 = vld [vmem:[%s1087_s30 + $0xf0] sm:$0xff] }
  0x21   : > { %v900_v4 = vcombine.high %v297_v1, %v301_v2  ;;  %v899_v6 = vcombine.low %v297_v1, %v301_v2  ;;  %v289_v7 = vld [vmem:[%s1087_s30 + $0x80] sm:$0xff]  ;;  %v902_v10 = vcombine.high %v298_v3, %v302_v5  ;;  %v901_v11 = vcombine.low %v298_v3, %v302_v5  ;;  %v290_v13 = vld [vmem:[%s1087_s30 + $0x88] sm:$0xff]  ;;  %v300_v34 = vld [vmem:[%s1087_s30 + $0xd8] sm:$0xff] }
  0x22   : > { %v293_v8 = vld [vmem:[%s1087_s30 + $0xa0] sm:$0xff]  ;;  %v294_v14 = vld [vmem:[%s1087_s30 + $0xa8] sm:$0xff]  ;;  %v304_v35 = vld [vmem:[%s1087_s30 + $0xf8] sm:$0xff]  ;;  %v904_v38 = vcombine.high %v299_v32, %v303_v33  ;;  %v903_v45 = vcombine.low %v299_v32, %v303_v33 }
  0x23   : > { %v892_v12 = vcombine.high %v289_v7, %v293_v8  ;;  %v281_v15 = vld [vmem:[%s1087_s30 + $0x40] sm:$0xff]  ;;  %482 = vmatprep.subr.bf16.mxu0 %v900_v4  ;;  %v894_v16 = vcombine.high %v290_v13, %v294_v14  ;;  %v282_v18 = vld [vmem:[%s1087_s30 + $0x48] sm:$0xff]  ;;  %523 = vmatprep.subr.bf16.mxu1 %v902_v10  ;;  %v891_v20 = vcombine.low %v289_v7, %v293_v8  ;;  %v291_v40 = vld [vmem:[%s1087_s30 + $0x90] sm:$0xff] }
  0x24   : > { %v285_v17 = vld [vmem:[%s1087_s30 + $0x60] sm:$0xff]  ;;  %v286_v19 = vld [vmem:[%s1087_s30 + $0x68] sm:$0xff]  ;;  %483 = vmatpush1.bf16.msra.mxu0 %v899_v6  ;;  %524 = vmatpush1.bf16.msra.mxu1 %v901_v11  ;;  %v893_v21 = vcombine.low %v290_v13, %v294_v14  ;;  %v906_v39 = vcombine.high %v300_v34, %v304_v35  ;;  %v295_v41 = vld [vmem:[%s1087_s30 + $0xb0] sm:$0xff]  ;;  %v905_v46 = vcombine.low %v300_v34, %v304_v35 }
  0x25   : > { %484 = vmatprep.subr.bf16.mxu0 %v892_v12  ;;  %v884_v22 = vcombine.high %v281_v15, %v285_v17  ;;  %525 = vmatprep.subr.bf16.mxu1 %v894_v16  ;;  %v886_v23 = vcombine.high %v282_v18, %v286_v19  ;;  %v273_v24 = vld [vmem:[%s1087_s30] sm:$0xff]  ;;  %v274_v26 = vld [vmem:[%s1087_s30 + $0x8] sm:$0xff]  ;;  %v883_v28 = vcombine.low %v281_v15, %v285_v17  ;;  %v292_v43 = vld [vmem:[%s1087_s30 + $0x98] sm:$0xff] }
  0x26   : > { %v277_v25 = vld [vmem:[%s1087_s30 + $0x20] sm:$0xff]  ;;  %v278_v27 = vld [vmem:[%s1087_s30 + $0x28] sm:$0xff]  ;;  %v885_v29 = vcombine.low %v282_v18, %v286_v19  ;;  %v296_v44 = vld [vmem:[%s1087_s30 + $0xb8] sm:$0xff]  ;;  %v896_v47 = vcombine.high %v291_v40, %v295_v41  ;;  %v895_v53 = vcombine.low %v291_v40, %v295_v41 }
  0x27   : > { %v876_v30 = vcombine.high %v273_v24, %v277_v25  ;;  %v878_v31 = vcombine.high %v274_v26, %v278_v27  ;;  %v875_v36 = vcombine.low %v273_v24, %v277_v25  ;;  %v877_v37 = vcombine.low %v274_v26, %v278_v27  ;;  %v967_v42 = vld [vmem:[%s1173_s1] sm:$0xff]   ;;  %v283_v49 = vld [vmem:[%s1087_s30 + $0x50] sm:$0xff]  ;;  %v284_v51 = vld [vmem:[%s1087_s30 + $0x58] sm:$0xff] }
  0x28   : > { %485 = vmatpush1.bf16.msra.mxu0 %v891_v20  ;;  %526 = vmatpush1.bf16.msra.mxu1 %v893_v21  ;;  %v898_v48 = vcombine.high %v292_v43, %v296_v44  ;;  %v287_v50 = vld [vmem:[%s1087_s30 + $0x70] sm:$0xff]  ;;  %v288_v52 = vld [vmem:[%s1087_s30 + $0x78] sm:$0xff]  ;;  %v897_v54 = vcombine.low %v292_v43, %v296_v44  ;;  %v650_v41 = vld [vmem:[#allocation3] sm:$0xff] }
  0x29   : > { %486 = vmatprep.subr.bf16.mxu0 %v884_v22  ;;  %527 = vmatprep.subr.bf16.mxu1 %v886_v23  ;;  %v888_v55 = vcombine.high %v283_v49, %v287_v50  ;;  %v890_v56 = vcombine.high %v284_v51, %v288_v52  ;;  %v275_v57 = vld [vmem:[%s1087_s30 + $0x10] sm:$0xff]  ;;  %v276_v59 = vld [vmem:[%s1087_s30 + $0x18] sm:$0xff]  ;;  %v887_v61 = vcombine.low %v283_v49, %v287_v50  ;;  %v663_v44 = vld [vmem:[#allocation4] sm:$0xff] }
  0x2a   : > { %v279_v58 = vld [vmem:[%s1087_s30 + $0x30] sm:$0xff]  ;;  %v280_v60 = vld [vmem:[%s1087_s30 + $0x38] sm:$0xff]  ;;  %v889_v62 = vcombine.low %v284_v51, %v288_v52 }
  0x2b   : > { %v880_v63 = vcombine.high %v275_v57, %v279_v58  ;;  %v882_v0 = vcombine.high %v276_v59, %v280_v60  ;;  %v879_v1 = vcombine.low %v275_v57, %v279_v58  ;;  %v881_v2 = vcombine.low %v276_v59, %v280_v60 }
  0x2c   : > { %487 = vmatpush1.bf16.msra.mxu0 %v883_v28  ;;  %528 = vmatpush1.bf16.msra.mxu1 %v885_v29 }
  0x2d   : > { %488 = vmatprep.subr.bf16.mxu0 %v876_v30  ;;  %529 = vmatprep.subr.bf16.mxu1 %v878_v31 }
  0x30   : > { %489 = vmatpush1.bf16.msra.mxu0 %v875_v36  ;;  %530 = vmatpush1.bf16.msra.mxu1 %v877_v37 }
  0x31   : > { %564 = vmatprep.subr.bf16.mxu0 %v904_v38  ;;  %605 = vmatprep.subr.bf16.mxu1 %v906_v39 }
  0x33   : > { %907 = vmatmul.mubr.msk.bf16.vlgmr.msra.gmra.mxu0 %vm470_vm1, %v967_v42  ;;  %908 = vmatmul.mubr.msk.bf16.vlgmr.msra.gmra.mxu1 %vm470_vm1, %v967_v42 }
  0x34   : > { %565 = vmatpush1.bf16.msra.mxu0 %v903_v45  ;;  %606 = vmatpush1.bf16.msra.mxu1 %v905_v46 }
  0x35   : > { %566 = vmatprep.subr.bf16.mxu0 %v896_v47  ;;  %607 = vmatprep.subr.bf16.mxu1 %v898_v48 }
  0x36   : > { %588 = vmatprep.mubr.bf16.mxu0 %v1014_v9  ;;  %629 = vmatprep.mubr.bf16.mxu1 %v1014_v9 }
  0x38   : > { %567 = vmatpush1.bf16.msra.mxu0 %v895_v53  ;;  %608 = vmatpush1.bf16.msra.mxu1 %v897_v54 }
  0x39   : > { %568 = vmatprep.subr.bf16.mxu0 %v888_v55  ;;  %609 = vmatprep.subr.bf16.mxu1 %v890_v56 }
  0x3c   : > { %569 = vmatpush1.bf16.msra.mxu0 %v887_v61  ;;  %610 = vmatpush1.bf16.msra.mxu1 %v889_v62 }
  0x3d   : > { %570 = vmatprep.subr.bf16.mxu0 %v880_v63  ;;  %611 = vmatprep.subr.bf16.mxu1 %v882_v0 }
  0x40   : > { %571 = vmatpush1.bf16.msra.mxu0 %v879_v1  ;;  %612 = vmatpush1.bf16.msra.mxu1 %v881_v2 }
  0x43   : > { %909 = vmatmul.mubr.msk.bf16.vlgmr.msra.gmra.mxu0 %vm470_vm1, %v967_v42  ;;  %910 = vmatmul.mubr.msk.bf16.vlgmr.msra.gmra.mxu1 %vm470_vm1, %v967_v42 }
  0xf3   : > { %v508_v3 = vpop.f32.mrf.mxu0  ;;  %v549_v4 = vpop.f32.mrf.mxu1 }
  0xf4   : > { %642 = vst [vmem:[%s1134_s7] sm:$0xff] %v508_v3  ;;  %644 = vst [vmem:[%s1134_s7 + $0x10] sm:$0xff] %v549_v4  ;;  %v664_v8 = vmul.f32 %v508_v3, %v508_v3  ;;  %v666_v14 = vmul.f32 %v549_v4, %v549_v4 }
  0xf5   : > { %v510_v5 = vpop.f32.mrf.mxu0  ;;  %v551_v6 = vpop.f32.mrf.mxu1 }
  0xf6   : > { %643 = vst [vmem:[%s1134_s7 + $0x8] sm:$0xff] %v510_v5  ;;  %645 = vst [vmem:[%s1134_s7 + $0x18] sm:$0xff] %v551_v6  ;;  %v665_v9 = vmul.f32 %v510_v5, %v510_v5  ;;  %v651_v12 = vadd.f32 %v510_v5, %v508_v3  ;;  %v667_v17 = vmul.f32 %v551_v6, %v551_v6 }
  0xf7   : > { %v512_v7 = vpop.f32.mrf.mxu0  ;;  %v553_v10 = vpop.f32.mrf.mxu1 }
  0xf8   : > { %v672_v15 = vadd.f32 %v665_v9, %v664_v8  ;;  %v652_v16 = vadd.f32 %v651_v12, %v549_v4 }
  0xf9   : > { %v513_v11 = vpop.f32.mrf.mxu0  ;;  %v554_v13 = vpop.f32.mrf.mxu1 }
  0xfa   : > { %v673_v18 = vadd.f32 %v672_v15, %v666_v14  ;;  %v653_v19 = vadd.f32 %v652_v16, %v551_v6 }
  0xfc   : > { %v674_v21 = vadd.f32 %v673_v18, %v667_v17 }
 0x103   : > { %v590_v20 = vpop.f32.mrf.mxu0  ;;  %v631_v24 = vpop.f32.mrf.mxu1 }
 0x104   : > { %646 = vst [vmem:[%s1134_s7 + $0x20] sm:$0xff] %v590_v20  ;;  %v654_v22 = vadd.f32 %v653_v19, %v590_v20  ;;  %v668_v23 = vmul.f32 %v590_v20, %v590_v20  ;;  %648 = vst [vmem:[%s1134_s7 + $0x30] sm:$0xff] %v631_v24  ;;  %v670_v27 = vmul.f32 %v631_v24, %v631_v24 }
 0x105   : > { %v592_v25 = vpop.f32.mrf.mxu0  ;;  %v633_v30 = vpop.f32.mrf.mxu1 }
 0x106   : > { %v675_v26 = vadd.f32 %v674_v21, %v668_v23  ;;  %647 = vst [vmem:[%s1134_s7 + $0x28] sm:$0xff] %v592_v25  ;;  %v655_v28 = vadd.f32 %v654_v22, %v592_v25  ;;  %v669_v29 = vmul.f32 %v592_v25, %v592_v25  ;;  %649 = vst [vmem:[%s1134_s7 + $0x38] sm:$0xff] %v633_v30 }
 0x107   : > { %v594_v31 = vpop.f32.mrf.mxu0  ;;  %v635_v32 = vpop.f32.mrf.mxu1  ;;  %v671_v39 = vmul.f32 %v633_v30, %v633_v30 }
 0x108   : > { %v656_v33 = vadd.f32 %v655_v28, %v631_v24  ;;  %v676_v34 = vadd.f32 %v675_v26, %v669_v29 }
 0x109   : > { %v595_v35 = vpop.f32.mrf.mxu0  ;;  %v636_v36 = vpop.f32.mrf.mxu1 }
 0x10a   : > { %v657_v37 = vadd.f32 %v656_v33, %v633_v30  ;;  %v677_v38 = vadd.f32 %v676_v34, %v670_v27 }
 0x10c   : > { %658 = vadd.xlane.f32.xlu0 %v657_v37  ;;  %v678_v40 = vadd.f32 %v677_v38, %v671_v39 }
 0x110   : > { %679 = vadd.xlane.f32.xlu0 %v678_v40 }
 0x195   : > { %v659_v42 = vpop.xlane.xlu0 %658 }
 0x196   : > { %v660_v43 = vadd.f32 %v659_v42, %v650_v41 }
 0x198   : > { %662 = vst.msk [vmem:[#allocation3] sm:$0xff] %vm661_vm2, %v660_v43 }
 0x199   : > { %v680_v45 = vpop.xlane.xlu0 %679 }
 0x19a   : > { %v681_v46 = vadd.f32 %v680_v45, %v663_v44 }
 0x19c   : > { %682 = vst.msk [vmem:[#allocation4] sm:$0xff] %vm661_vm2, %v681_v46 }
 0x19d PF: > { %p913_p11 = scmp.ne.s32.totalorder %s999_s13, 1 }
 0x19e   : > { %s1017_s10 = smov (!%p913_p11), 1   ;;  %s921_s11 = sshll.u32 (!%p913_p11), %s995_s12, 6 }
 0x19f   : > { %686 = sbr.rel (%p913_p11) target bundleno = 698 (0x2ba), region = 44  ;;  %s707_s13 = scalar_lea.vmem (!%p913_p11), [#allocation2], %s921_s11 }
 0x1a4   : > { %v687_v47 = vld [vmem:[#allocation3] sm:$0xff]  ;;  %v689_v48 = vld [vmem:[#allocation4] sm:$0xff]  ;;  %v1015_v51 = vmov 0   ;;  %v1016_v56 = vmov 1   ;;  %v710_v1 = vld [vmem:[%s707_s13 + $0x10] sm:$0xff] }
 0x1a5   : > { %v688_v49 = vmul.f32 0.00048828125, %v687_v47  ;;  %v690_v50 = vmul.f32 0.00048828125, %v689_v48  ;;  %968 = vset.pattern.permute.xlu0 %v1015_v51  ;;  %969 = vset.pattern.permute.xlu1 %v1016_v56  ;;  %v694_v57 = vld [vmem:[%s1174_s2] sm:$0xff]  ;;  %v709_v0 = vld [vmem:[%s707_s13 + $0x8] sm:$0xff]  ;;  %v711_v2 = vld [vmem:[%s707_s13 + $0x18] sm:$0xff] }
 0x1a6   : > { %v708_v63 = vld [vmem:[%s707_s13] sm:$0xff]  ;;  %v713_v5 = vld [vmem:[%s707_s13 + $0x28] sm:$0xff]  ;;  %v714_v6 = vld [vmem:[%s707_s13 + $0x30] sm:$0xff] }
 0x1a7   : > { %v691_v52 = vmul.f32 %v688_v49, %v688_v49  ;;  %v712_v3 = vld [vmem:[%s707_s13 + $0x20] sm:$0xff]  ;;  %v715_v7 = vld [vmem:[%s707_s13 + $0x38] sm:$0xff] }
 0x1a9   : > { %v692_v53 = vsub.f32 %v690_v50, %v691_v52 }
 0x1ab   : > { %v693_v54 = vmax.f32 %v692_v53, 0.0 }
 0x1ad   : > { %v695_v55 = vadd.f32 1e-05, %v693_v54 }
 0x1af   : > { %971 = vrsqrt.f32 %v695_v55 }
 0x1bc   : > { %v972_v58 = vpop.eup %971 }
 0x1bd   : > { %v697_v59 = vmul.f32 %v972_v58, %v694_v57 }
 0x1bf   : > { %v698_v60 = vmul.f32 %v697_v59, %v688_v49 }
 0x1c1   : > { %700 = vrot.lane.b32.xlu0 %v698_v60, %s1017_s10 }
 0x1c5   : > { %718 = vperm.xlu0 %968, %v697_v59  }
 0x1c9   : > { %970 = vset.pattern.permute.xlu0 %v1016_v56 }
 0x233   : > { %v701_v61 = vpop.permute.xlu0 %700 }
 0x234   : > { %v703_v62 = vsub.f32 %v694_v57, %v701_v61 }
 0x236   : > { %731 = vperm.xlu1 %969, %v703_v62  }
 0x240   : > { %v719_v4 = vpop.permute.xlu0 %718 }
 0x241   : > { %v721_v8 = vmul.f32 %v719_v4, %v708_v63  ;;  %v722_v9 = vmul.f32 %v719_v4, %v709_v0  ;;  %v723_v10 = vmul.f32 %v719_v4, %v710_v1  ;;  %v724_v11 = vmul.f32 %v719_v4, %v711_v2 }
 0x242   : > { %v725_v12 = vmul.f32 %v719_v4, %v712_v3  ;;  %v726_v13 = vmul.f32 %v719_v4, %v713_v5  ;;  %v727_v14 = vmul.f32 %v719_v4, %v714_v6  ;;  %v728_v15 = vmul.f32 %v719_v4, %v715_v7 }
 0x2b1   : > { %v732_v16 = vpop.permute.xlu1 %731 }
 0x2b2   : > { %v734_v17 = vadd.f32 %v732_v16, %v721_v8  ;;  %v735_v18 = vadd.f32 %v732_v16, %v722_v9  ;;  %v736_v19 = vadd.f32 %v732_v16, %v723_v10  ;;  %v737_v20 = vadd.f32 %v732_v16, %v724_v11 }
 0x2b3   : > { %v738_v21 = vadd.f32 %v732_v16, %v725_v12  ;;  %v739_v22 = vadd.f32 %v732_v16, %v726_v13  ;;  %v740_v23 = vadd.f32 %v732_v16, %v727_v14  ;;  %v741_v24 = vadd.f32 %v732_v16, %v728_v15 }
 0x2b4   : > { %v742_v25 = vmax.f32 %v734_v17, 0.0  ;;  %v743_v26 = vmax.f32 %v735_v18, 0.0  ;;  %v744_v27 = vmax.f32 %v736_v19, 0.0  ;;  %v745_v28 = vmax.f32 %v737_v20, 0.0 }
 0x2b5   : > { %v746_v29 = vmax.f32 %v738_v21, 0.0  ;;  %v747_v30 = vmax.f32 %v739_v22, 0.0  ;;  %v748_v31 = vmax.f32 %v740_v23, 0.0  ;;  %v749_v32 = vmax.f32 %v741_v24, 0.0 }
 0x2b6   : > { %750 = vst [vmem:[%s1082_s27] sm:$0xff] %v742_v25  ;;  %751 = vst [vmem:[%s1082_s27 + $0x8] sm:$0xff] %v743_v26 }
 0x2b7   : > { %752 = vst [vmem:[%s1082_s27 + $0x10] sm:$0xff] %v744_v27  ;;  %753 = vst [vmem:[%s1082_s27 + $0x18] sm:$0xff] %v745_v28 }
 0x2b8   : > { %754 = vst [vmem:[%s1082_s27 + $0x20] sm:$0xff] %v746_v29  ;;  %755 = vst [vmem:[%s1082_s27 + $0x28] sm:$0xff] %v747_v30 }
 0x2b9   : > { %756 = vst [vmem:[%s1082_s27 + $0x30] sm:$0xff] %v748_v31  ;;  %757 = vst [vmem:[%s1082_s27 + $0x38] sm:$0xff] %v749_v32 }
 0x2ba PF: > { %s13_s16 = sadd.s32 1, %s1011_s16   ;;  %s1176_s12 = smov %s1003_s14 }
 0x2bb   : > { %p10_p12 = scmp.ge.s32.totalorder %s13_s16, 6   ;;  %s1177_s13 = smov %s1007_s15 }
 0x2bc   : > { %s1178_s14 = smov %s1181_s17  ;;  %s1179_s15 = smov %s1185_s18 }
 0x2bd   :  { %12 = sbr.rel (!%p10_p12) target bundleno = 3 (0x3), region = 76 }

</bundles_post_ra>
